<compile_context>
chip_gen: v6e
topology: v6e:2x2x1
jax: 0.10.0
libtpu: 0.0.40
codegen_flags: <defaults>
</compile_context>

<pallas_src>
import jax
import jax.numpy as jnp
from jax.experimental import pallas as pl
from jax.experimental.pallas import tpu as pltpu


def _round_up(v, m):
    return ((v + m - 1) // m) * m


def _flat_wrapper_kernel(a_ref, x_ref, sf_ref, w1_ref, w2_ref, b_ref,
                         o_ref, acc_ref):
    # grid = (row block i: "parallel", S-reduction block k: "arbitrary")
    k = pl.program_id(1)
    nk = pl.num_programs(1)

    # --- init accumulator (holds A_hat @ x aggregation, f32) -----------------
    @pl.when(k == 0)
    def _():
        acc_ref[...] = jnp.zeros_like(acc_ref)

    # --- message-passing partial sum: A_hat[i, k] @ x[k]  (bf16 -> f32 acc) --
    acc_ref[...] += jnp.dot(a_ref[...], x_ref[...],
                            preferred_element_type=jnp.float32)

    # --- finalize (once per row block): W1 / W2 branches, bias, ReLU ---------
    @pl.when(k == nk - 1)
    def _():
        agg = acc_ref[...].astype(jnp.bfloat16)          # single cast of full sum
        h = (jnp.dot(agg, w1_ref[...], preferred_element_type=jnp.float32)
             + jnp.dot(sf_ref[...], w2_ref[...],
                       preferred_element_type=jnp.float32)
             + b_ref[...])
        o_ref[...] = jnp.maximum(h, 0.0).astype(o_ref.dtype)


def flat_wrapper_forward(x, edge_index, flat_feats, sub_nodes, params):
    """JAX wrapper: XLA row-gather of flat_feats (FlatWrapper.forward line 1),
    dense GCN-normalized adjacency (glue for the synthetic model), padding to
    lane/MXU-friendly shapes, then the fused tiled Pallas kernel."""
    w1, w2, b = params
    S, Fin = x.shape
    Nf, Ff = flat_feats.shape
    H = w1.shape[1]

    f32, bf16 = jnp.float32, jnp.bfloat16

    # ---- adaptive tiling over the S (node / neighbor) axis -------------------
    s128 = _round_up(S, 128)
    tile = 256 if s128 >= 256 else 128     # 256 fills v6e/v7x MXU; 128 otherwise
    tm = tk = tile
    S_p = _round_up(S, tile)
    Fin_p = _round_up(Fin, 128)
    Ff_p = _round_up(Ff, 128)
    H_p = _round_up(H, 128)

    # ---- FlatWrapper semantics: sub_flat = flat_feats[sub_nodes] -------------
    idx = jnp.clip(sub_nodes.astype(jnp.int32), 0, Nf - 1)
    sub_flat = flat_feats[idx]                             # (S, Ff) XLA gather
    sf_p = jnp.zeros((S_p, Ff_p), bf16).at[:S, :Ff].set(sub_flat.astype(bf16))

    # ---- glue: GCN-normalized dense adjacency with self loops ----------------
    src, dst = edge_index[0], edge_index[1]
    adj = jnp.zeros((S, S), f32).at[dst, src].set(1.0) + jnp.eye(S, dtype=f32)
    deg = jnp.sum(adj, axis=1)
    d_inv_sqrt = jnp.where(deg > 0, 1.0 / jnp.sqrt(deg), 0.0)
    a_hat = adj * d_inv_sqrt[:, None] * d_inv_sqrt[None, :]

    # ---- pad to tile-friendly shapes; matmul operands -> bf16 ----------------
    a_p = jnp.zeros((S_p, S_p), bf16).at[:S, :S].set(a_hat.astype(bf16))
    x_p = jnp.zeros((S_p, Fin_p), bf16).at[:S, :Fin].set(x.astype(bf16))
    w1_p = jnp.zeros((Fin_p, H_p), bf16).at[:Fin, :H].set(w1.astype(bf16))
    w2_p = jnp.zeros((Ff_p, H_p), bf16).at[:Ff, :H].set(w2.astype(bf16))
    b_p = jnp.zeros((1, H_p), f32).at[:, :H].set(b.astype(f32))

    grid = (S_p // tm, S_p // tk)

    out = pl.pallas_call(
        _flat_wrapper_kernel,
        out_shape=jax.ShapeDtypeStruct((S_p, H_p), f32),
        grid_spec=pltpu.PrefetchScalarGridSpec(
            num_scalar_prefetch=0,
            grid=grid,
            in_specs=[
                pl.BlockSpec((tm, tk), lambda i, k: (i, k)),       # A_hat block
                pl.BlockSpec((tk, Fin_p), lambda i, k: (k, 0)),    # x block
                pl.BlockSpec((tm, Ff_p), lambda i, k: (i, 0)),     # sub_flat rows
                pl.BlockSpec((Fin_p, H_p), lambda i, k: (0, 0)),   # W1 (resident)
                pl.BlockSpec((Ff_p, H_p), lambda i, k: (0, 0)),    # W2 (resident)
                pl.BlockSpec((1, H_p), lambda i, k: (0, 0)),       # bias (resident)
            ],
            out_specs=pl.BlockSpec((tm, H_p), lambda i, k: (i, 0)),
            scratch_shapes=[
                pltpu.VMEM((tm, Fin_p), jnp.float32),              # f32 agg accumulator
            ],
        ),
        compiler_params=pltpu.CompilerParams(
            dimension_semantics=("parallel", "arbitrary"),
            vmem_limit_bytes=48 * 1024 * 1024,
        ),
    )(a_p, x_p, sf_p, w1_p, w2_p, b_p)

    return out[:S, :H]


def _reference(x, edge_index, flat_feats, sub_nodes, params):
    """Pure-JAX reference mirroring the kernel's bf16-operand / f32-accumulate
    numerics (for a tight correctness check)."""
    w1, w2, b = params
    S = x.shape[0]
    bf = jnp.bfloat16
    sub_flat = flat_feats[jnp.clip(sub_nodes, 0, flat_feats.shape[0] - 1)]
    src, dst = edge_index[0], edge_index[1]
    adj = jnp.zeros((S, S), jnp.float32).at[dst, src].set(1.0) + jnp.eye(S)
    deg = jnp.sum(adj, axis=1)
    d = jnp.where(deg > 0, 1.0 / jnp.sqrt(deg), 0.0)
    a_hat = adj * d[:, None] * d[None, :]
    agg = jnp.dot(a_hat.astype(bf), x.astype(bf),
                  preferred_element_type=jnp.float32)
    h = (jnp.dot(agg.astype(bf), w1.astype(bf),
                 preferred_element_type=jnp.float32)
         + jnp.dot(sub_flat.astype(bf), w2.astype(bf),
                   preferred_element_type=jnp.float32)
         + b)
    return jnp.maximum(h, 0.0)


if __name__ == "__main__":
    # small shapes consistent with the module's forward
    S = 16       # number of subgraph nodes (rows of x, len(sub_nodes))
    Nf = 32      # total nodes in flat_feats
    Fin = 32     # node feature dim
    Ff = 32      # flat feature dim
    H = 32       # model hidden/output dim
    E = 24       # number of edges

    key = jax.random.PRNGKey(0)
    k_x, k_ff, k_sub, k_ei, k_w1, k_w2, k_b = jax.random.split(key, 7)

    x = jax.random.normal(k_x, (S, Fin), jnp.float32)
    flat_feats = jax.random.normal(k_ff, (Nf, Ff), jnp.float32)
    sub_nodes = jax.random.randint(k_sub, (S,), 0, Nf, jnp.int32)
    edge_index = jax.random.randint(k_ei, (2, E), 0, S, jnp.int32)

    # deterministic synthetic model parameters
    w1 = jax.random.normal(k_w1, (Fin, H), jnp.float32) * 0.1
    w2 = jax.random.normal(k_w2, (Ff, H), jnp.float32) * 0.1
    b = jax.random.normal(k_b, (1, H), jnp.float32) * 0.1
    params = (w1, w2, b)

    out = flat_wrapper_forward(x, edge_index, flat_feats, sub_nodes, params)
    out = jax.block_until_ready(out)

    ref = _reference(x, edge_index, flat_feats, sub_nodes, params)
    assert out.shape == (S, H)
    assert jnp.allclose(out, ref, atol=1e-2, rtol=1e-2), "mismatch vs JAX reference"

    print("KERNEL_OK")
</pallas_src>

<mosaic_0001>
module attributes {stable_mosaic.version = 11 : i64} {
  func.func @_flat_wrapper_kernel(%arg0: i32, %arg1: i32, %arg2: memref<128x128xbf16, #tpu.memory_space<vmem>>, %arg3: memref<128x128xbf16, #tpu.memory_space<vmem>>, %arg4: memref<128x128xbf16, #tpu.memory_space<vmem>>, %arg5: memref<128x128xbf16, #tpu.memory_space<vmem>>, %arg6: memref<128x128xbf16, #tpu.memory_space<vmem>>, %arg7: memref<1x128xf32, #tpu.memory_space<vmem>>, %arg8: memref<128x128xf32, #tpu.memory_space<vmem>>, %arg9: memref<128x128xf32, #tpu.memory_space<vmem>>) attributes {dimension_semantics = [#tpu.dimension_semantics<parallel>, #tpu.dimension_semantics<arbitrary>], iteration_bounds = array<i64: 1, 1>, scalar_prefetch = 0 : i64, scratch_operands = 1 : i64, tpu.core_type = #tpu.core_type<tc>, window_params = [{transform_indices = @transform_0, window_bounds = array<i64: 128, 128>}, {transform_indices = @transform_1, window_bounds = array<i64: 128, 128>}, {transform_indices = @transform_2, window_bounds = array<i64: 128, 128>}, {pipeline_mode = #tpu.pipeline_mode<synchronous>, transform_indices = @transform_3, window_bounds = array<i64: 128, 128>}, {pipeline_mode = #tpu.pipeline_mode<synchronous>, transform_indices = @transform_4, window_bounds = array<i64: 128, 128>}, {pipeline_mode = #tpu.pipeline_mode<synchronous>, transform_indices = @transform_5, window_bounds = array<i64: 1, 128>}, {transform_indices = @transform_6, window_bounds = array<i64: 128, 128>}]} {
    %c0_i32 = arith.constant 0 : i32
    %0 = arith.cmpi eq, %arg1, %c0_i32 : i32
    %1 = arith.extui %0 : i1 to i32
    %c0_i32_0 = arith.constant 0 : i32
    %2 = arith.cmpi ne, %1, %c0_i32_0 : i32
    scf.if %2 {
      %cst_10 = arith.constant 0.000000e+00 : f32
      %12 = vector.broadcast %cst_10 : f32 to vector<128x128xf32>
      %c0_11 = arith.constant 0 : index
      %c0_12 = arith.constant 0 : index
      %13 = vector.load %arg9[%c0_11, %c0_12] : memref<128x128xf32, #tpu.memory_space<vmem>>, vector<128x128xf32>
      tpu.vector_store %arg9[%c0_11, %c0_12], %12 {strides = array<i32>} : memref<128x128xf32, #tpu.memory_space<vmem>>, vector<128x128xf32>,
    } else {
    }
    %c0 = arith.constant 0 : index
    %c0_1 = arith.constant 0 : index
    %3 = vector.load %arg9[%c0, %c0_1] : memref<128x128xf32, #tpu.memory_space<vmem>>, vector<128x128xf32>
    %c0_2 = arith.constant 0 : index
    %c0_3 = arith.constant 0 : index
    %4 = vector.load %arg2[%c0_2, %c0_3] : memref<128x128xbf16, #tpu.memory_space<vmem>>, vector<128x128xbf16>
    %c0_4 = arith.constant 0 : index
    %c0_5 = arith.constant 0 : index
    %5 = vector.load %arg3[%c0_4, %c0_5] : memref<128x128xbf16, #tpu.memory_space<vmem>>, vector<128x128xbf16>
    %cst = arith.constant dense<0.000000e+00> : vector<128x128xf32>
    %6 = tpu.matmul %4, %5, %cst {dimension_numbers = #tpu.dot_dimension_numbers<[1], [0], [0], [1], [0, 0, 1, 1], [], []>} : vector<128x128xbf16>, vector<128x128xbf16>, vector<128x128xf32> -> vector<128x128xf32>
    %7 = arith.addf %3, %6 : vector<128x128xf32>
    %c0_6 = arith.constant 0 : index
    %c0_7 = arith.constant 0 : index
    %8 = vector.load %arg9[%c0_6, %c0_7] : memref<128x128xf32, #tpu.memory_space<vmem>>, vector<128x128xf32>
    tpu.vector_store %arg9[%c0_6, %c0_7], %7 {strides = array<i32>} : memref<128x128xf32, #tpu.memory_space<vmem>>, vector<128x128xf32>,
    %c0_i32_8 = arith.constant 0 : i32
    %9 = arith.cmpi eq, %arg1, %c0_i32_8 : i32
    %10 = arith.extui %9 : i1 to i32
    %c0_i32_9 = arith.constant 0 : i32
    %11 = arith.cmpi ne, %10, %c0_i32_9 : i32
    scf.if %11 {
      %c0_10 = arith.constant 0 : index
      %c0_11 = arith.constant 0 : index
      %12 = vector.load %arg9[%c0_10, %c0_11] : memref<128x128xf32, #tpu.memory_space<vmem>>, vector<128x128xf32>
      %13 = arith.truncf %12 : vector<128x128xf32> to vector<128x128xbf16>
      %c0_12 = arith.constant 0 : index
      %c0_13 = arith.constant 0 : index
      %14 = vector.load %arg5[%c0_12, %c0_13] : memref<128x128xbf16, #tpu.memory_space<vmem>>, vector<128x128xbf16>
      %cst_14 = arith.constant dense<0.000000e+00> : vector<128x128xf32>
      %15 = tpu.matmul %13, %14, %cst_14 {dimension_numbers = #tpu.dot_dimension_numbers<[1], [0], [0], [1], [0, 0, 1, 1], [], []>} : vector<128x128xbf16>, vector<128x128xbf16>, vector<128x128xf32> -> vector<128x128xf32>
      %c0_15 = arith.constant 0 : index
      %c0_16 = arith.constant 0 : index
      %16 = vector.load %arg4[%c0_15, %c0_16] : memref<128x128xbf16, #tpu.memory_space<vmem>>, vector<128x128xbf16>
      %c0_17 = arith.constant 0 : index
      %c0_18 = arith.constant 0 : index
      %17 = vector.load %arg6[%c0_17, %c0_18] : memref<128x128xbf16, #tpu.memory_space<vmem>>, vector<128x128xbf16>
      %cst_19 = arith.constant dense<0.000000e+00> : vector<128x128xf32>
      %18 = tpu.matmul %16, %17, %cst_19 {dimension_numbers = #tpu.dot_dimension_numbers<[1], [0], [0], [1], [0, 0, 1, 1], [], []>} : vector<128x128xbf16>, vector<128x128xbf16>, vector<128x128xf32> -> vector<128x128xf32>
      %19 = arith.addf %15, %18 : vector<128x128xf32>
      %c0_20 = arith.constant 0 : index
      %c0_21 = arith.constant 0 : index
      %20 = vector.load %arg7[%c0_20, %c0_21] : memref<1x128xf32, #tpu.memory_space<vmem>>, vector<1x128xf32>
      %21 = vector.broadcast %20 : vector<1x128xf32> to vector<128x128xf32>
      %22 = arith.addf %19, %21 : vector<128x128xf32>
      %cst_22 = arith.constant 0.000000e+00 : f32
      %23 = vector.broadcast %cst_22 : f32 to vector<128x128xf32>
      %24 = arith.maximumf %22, %23 : vector<128x128xf32>
      %c0_23 = arith.constant 0 : index
      %c0_24 = arith.constant 0 : index
      %25 = vector.load %arg8[%c0_23, %c0_24] : memref<128x128xf32, #tpu.memory_space<vmem>>, vector<128x128xf32>
      tpu.vector_store %arg8[%c0_23, %c0_24], %24 {strides = array<i32>} : memref<128x128xf32, #tpu.memory_space<vmem>>, vector<128x128xf32>,
    } else {
    }
    return
  }
  func.func @transform_0(%arg0: i32, %arg1: i32) -> (i32, i32) {
    %c0_i32 = arith.constant 0 : i32
    return %arg0, %arg1 : i32, i32
  }
  func.func @transform_1(%arg0: i32, %arg1: i32) -> (i32, i32) {
    %c0_i32 = arith.constant 0 : i32
    %c0_i32_0 = arith.constant 0 : i32
    return %arg1, %c0_i32 : i32, i32
  }
  func.func @transform_2(%arg0: i32, %arg1: i32) -> (i32, i32) {
    %c0_i32 = arith.constant 0 : i32
    %c0_i32_0 = arith.constant 0 : i32
    return %arg0, %c0_i32 : i32, i32
  }
  func.func @transform_3(%arg0: i32, %arg1: i32) -> (i32, i32) {
    %c0_i32 = arith.constant 0 : i32
    %c0_i32_0 = arith.constant 0 : i32
    %c0_i32_1 = arith.constant 0 : i32
    return %c0_i32, %c0_i32_0 : i32, i32
  }
  func.func @transform_4(%arg0: i32, %arg1: i32) -> (i32, i32) {
    %c0_i32 = arith.constant 0 : i32
    %c0_i32_0 = arith.constant 0 : i32
    %c0_i32_1 = arith.constant 0 : i32
    return %c0_i32, %c0_i32_0 : i32, i32
  }
  func.func @transform_5(%arg0: i32, %arg1: i32) -> (i32, i32) {
    %c0_i32 = arith.constant 0 : i32
    %c0_i32_0 = arith.constant 0 : i32
    %c0_i32_1 = arith.constant 0 : i32
    return %c0_i32, %c0_i32_0 : i32, i32
  }
  func.func @transform_6(%arg0: i32, %arg1: i32) -> (i32, i32) {
    %c0_i32 = arith.constant 0 : i32
    %c0_i32_0 = arith.constant 0 : i32
    return %arg0, %c0_i32 : i32, i32
  }
}

</mosaic_0001>

<bundles_post_ra>
// kernel: tpu_custom_call.1
= control target key start
LH: loop header
LB: loop body
LE: loop exit
PB: predicated region body
PF: predicated region fallthrough
CT: control target
= control target key end

     0   :  { %11 = vsyncpa [#allocation4], 0  ;;  %s1351_s0 = inlined_call_operand.hbm [shape: bf16[128,128], index: 0, kind: input, shape index: {}]   ;;  %s1352_s1 = inlined_call_operand.hbm [shape: bf16[128,128], index: 1, kind: input, shape index: {}]   ;;  %s1353_s2 = inlined_call_operand.hbm [shape: bf16[128,128], index: 2, kind: input, shape index: {}]   ;;  %s1354_s3 = inlined_call_operand.hbm [shape: bf16[128,128], index: 3, kind: input, shape index: {}]   ;;  %s1355_s4 = inlined_call_operand.hbm [shape: bf16[128,128], index: 4, kind: input, shape index: {}]   ;;  %s1356_s5 = inlined_call_operand.vmem [shape: f32[1,128], index: 5, kind: input, shape index: {}]   ;;  %s1357_s6 = inlined_call_operand.hbm [shape: f32[128,128], index: 6, kind: output, shape index: {}]  }
   0x1   :  { %12 = vsyncpa [#allocation7], 0 }
   0x2   :  { %13 = vsyncpa [#allocation10], 0 }
   0x3   :  { %14 = vsyncpa [#allocation5], 0  ;;  %s1252_s21 = smov [#allocation6]   ;;  %s1253_s23 = smov [#allocation9]  }
   0x4   :  { %s32_s22 = sshll.u32 %s1252_s21, 4  ;;  %s56_s24 = sshll.u32 %s1253_s23, 4  ;;  %s33_s22 = int_to_ptr.vmem [resolvable:$true] %s32_s22  ;;  %s57_s24 = int_to_ptr.vmem [resolvable:$true] %s56_s24 }
   0x5   :  { %s1132_s25 = scalar_lea.vmem %s33_s22, 1024  ;;  %p1137_p1 = scmp.lt.s32.totalorder %s33_s22, %s33_s22 }
   0x6   :  { %p1133_p0 = scmp.ne.s32.totalorder %s33_s22, %s1132_s25  ;;  %p1138_p2 = scmp.lt.s32.totalorder %s1132_s25, %s1132_s25 }
   0x8   :  { %p1139_p3 = por %p1138_p2, %p1137_p1 }
   0xa   :  { %p1140_p4 = pnand %p1139_p3, %p1133_p0 }
   0xc   :  { %1143 = shalt.err (!%p1140_p4)
}
   0xd   :  { %s1254_s26 = smov 64   ;;  %s1255_s27 = smov 4  }
   0xe   :  { %38 = dma.hbm_to_vmem [thread:$0]  %s1352_s1, 1024, %s33_s22, [#allocation7], %s1254_s26, %s1254_s26, %s1255_s27  }
   0xf   :  { %s1152_s30 = scalar_lea.vmem %s57_s24, 1024  ;;  %p1157_p6 = scmp.lt.s32.totalorder %s57_s24, %s57_s24 }
  0x10   :  { %p1153_p5 = scmp.ne.s32.totalorder %s57_s24, %s1152_s30  ;;  %p1158_p7 = scmp.lt.s32.totalorder %s1152_s30, %s1152_s30 }
  0x12   :  { %p1159_p8 = por %p1158_p7, %p1157_p6 }
  0x14   :  { %p1160_p9 = pnand %p1159_p8, %p1153_p5 }
  0x16   :  { %1163 = shalt.err (!%p1160_p9)
}
  0x17   :  { %62 = dma.hbm_to_vmem [thread:$0]  %s1354_s3, 1024, %s57_s24, [#allocation10], %s1254_s26, %s1254_s26, %s1255_s27  }
  0x18   :  { %s1256_s9 = smov [#allocation3]   ;;  %s1257_s11 = smov [#allocation8]  }
  0x19   :  { %s20_s10 = sshll.u32 %s1256_s9, 4  ;;  %s44_s12 = sshll.u32 %s1257_s11, 4  ;;  %s21_s10 = int_to_ptr.vmem [resolvable:$true] %s20_s10  ;;  %s45_s12 = int_to_ptr.vmem [resolvable:$true] %s44_s12 }
  0x1a   :  { %s1172_s1 = scalar_lea.vmem %s21_s10, 1024  ;;  %p1177_p11 = scmp.lt.s32.totalorder %s21_s10, %s21_s10 }
  0x1b   :  { %p1173_p10 = scmp.ne.s32.totalorder %s21_s10, %s1172_s1  ;;  %p1178_p12 = scmp.lt.s32.totalorder %s1172_s1, %s1172_s1 }
  0x1d   :  { %p1179_p13 = por %p1178_p12, %p1177_p11 }
  0x1f   :  { %p1180_p0 = pnand %p1179_p13, %p1173_p10 }
  0x21   :  { %1183 = shalt.err (!%p1180_p0)
}
  0x22   :  { %26 = dma.hbm_to_vmem [thread:$0]  %s1351_s0, 1024, %s21_s10, [#allocation4], %s1254_s26, %s1254_s26, %s1255_s27  }
  0x23   :  { %s1192_s3 = scalar_lea.vmem %s45_s12, 1024  ;;  %p1197_p2 = scmp.lt.s32.totalorder %s45_s12, %s45_s12 }
  0x24   :  { %p1193_p1 = scmp.ne.s32.totalorder %s45_s12, %s1192_s3  ;;  %p1198_p3 = scmp.lt.s32.totalorder %s1192_s3, %s1192_s3 }
  0x26   :  { %p1199_p4 = por %p1198_p3, %p1197_p2 }
  0x28   :  { %p1200_p5 = pnand %p1199_p4, %p1193_p1 }
  0x2a   :  { %1203 = shalt.err (!%p1200_p5)
}
  0x2b   :  { %50 = dma.hbm_to_vmem [thread:$0]  %s1353_s2, 1024, %s45_s12, [#allocation7], %s1254_s26, %s1254_s26, %s1255_s27  }
  0x2c   :  { %s1258_s17 = smov [#allocation11]  }
  0x2d   :  { %s68_s18 = sshll.u32 %s1258_s17, 4  ;;  %s69_s18 = int_to_ptr.vmem [resolvable:$true] %s68_s18 }
  0x2e   :  { %s1212_s19 = scalar_lea.vmem %s69_s18, 1024  ;;  %p1217_p7 = scmp.lt.s32.totalorder %s69_s18, %s69_s18 }
  0x2f   :  { %p1213_p6 = scmp.ne.s32.totalorder %s69_s18, %s1212_s19  ;;  %p1218_p8 = scmp.lt.s32.totalorder %s1212_s19, %s1212_s19 }
  0x31   :  { %p1219_p9 = por %p1218_p8, %p1217_p7 }
  0x33   :  { %p1220_p10 = pnand %p1219_p9, %p1213_p6 }
  0x35   :  { %1223 = shalt.err (!%p1220_p10)
}
  0x36   :  { %74 = dma.hbm_to_vmem [thread:$0]  %s1355_s4, 1024, %s69_s18, [#allocation10], %s1254_s26, %s1254_s26, %s1255_s27  }
  0x37   :  { %1244 = dma.done.wait [#allocation4], 1024  }
  0x38   :  { %1245 = vsyncadd [#allocation4], 4294966272 }
  0x39   :  { %1246 = dma.done.wait [#allocation7], 2048  }
  0x3a   :  { %1247 = vsyncadd [#allocation7], 4294965248 }
  0x3b   :  { %1248 = dma.done.wait [#allocation10], 2048  }
  0x3c   :  { %1249 = vsyncadd [#allocation10], 4294965248  ;;  %v1084_v0 = vld [vmem:[#allocation6 + $0x38] sm:$0xff]   ;;  %v1085_v1 = vld [vmem:[#allocation6 + $0x30] sm:$0xff]  }
  0x3d   :  { %962 = vmatprep.subr.bf16.mxu0 %v1084_v0  ;;  %v1086_v2 = vld [vmem:[#allocation6 + $0x28] sm:$0xff]   ;;  %v1087_v3 = vld [vmem:[#allocation6 + $0x20] sm:$0xff]   ;;  %v1088_v5 = vld [vmem:[#allocation6 + $0x18] sm:$0xff]  }
  0x3e   :  { %963 = vmatpush3.bf16.msra.mxu0 %v1084_v0  ;;  %v1092_v4 = vld [vmem:[#allocation3] sm:$0xff]   ;;  %v1089_v6 = vld [vmem:[#allocation6 + $0x10] sm:$0xff]   ;;  %v1100_v7 = vld [vmem:[#allocation11 + $0x38] sm:$0xff]  }
  0x3f   :  { %964 = vmatprep.subr.bf16.mxu0 %v1085_v1  ;;  %978 = vmatprep.mubr.bf16.mxu0 %v1092_v4  ;;  %v1101_v8 = vld [vmem:[#allocation11 + $0x30] sm:$0xff]   ;;  %v1090_v9 = vld [vmem:[#allocation6 + $0x8] sm:$0xff]   ;;  %v1091_v11 = vld [vmem:[#allocation6] sm:$0xff]  }
  0x40   :  { %994 = vmatprep.subr.bf16.mxu1 %v1100_v7  ;;  %v1102_v10 = vld [vmem:[#allocation11 + $0x28] sm:$0xff]   ;;  %v1103_v12 = vld [vmem:[#allocation11 + $0x20] sm:$0xff]   ;;  %v1104_v13 = vld [vmem:[#allocation11 + $0x18] sm:$0xff]  }
  0x41   :  { %995 = vmatpush3.bf16.msra.mxu1 %v1100_v7  ;;  %v1111_v14 = vld [vmem:[#allocation8] sm:$0xff]   ;;  %v1106_v15 = vld [vmem:[#allocation9 + $0x38] sm:$0xff]   ;;  %v1093_v16 = vld [vmem:[#allocation3 + $0x8] sm:$0xff]  }
  0x42   :  { %965 = vmatpush3.bf16.msra.mxu0 %v1085_v1  ;;  %996 = vmatprep.subr.bf16.mxu1 %v1101_v8  ;;  %v1094_v17 = vld [vmem:[#allocation3 + $0x10] sm:$0xff]   ;;  %v1107_v20 = vld [vmem:[#allocation11 + $0x8] sm:$0xff]   ;;  %v1095_v22 = vld [vmem:[#allocation3 + $0x18] sm:$0xff]  }
  0x43   :  { %966 = vmatprep.subr.bf16.mxu0 %v1086_v2  ;;  %1010 = vmatprep.mubr.bf16.mxu1 %v1111_v14  ;;  %v1105_v18 = vld [vmem:[#allocation11 + $0x10] sm:$0xff]   ;;  %v1110_v21 = vld [vmem:[#allocation9 + $0x28] sm:$0xff]   ;;  %v1096_v23 = vld [vmem:[#allocation3 + $0x20] sm:$0xff]  }
  0x44   :  { %v1108_v19 = vld [vmem:[#allocation9 + $0x30] sm:$0xff]   ;;  %v1109_v24 = vld [vmem:[#allocation11] sm:$0xff]   ;;  %v1114_v26 = vld [vmem:[#allocation9 + $0x18] sm:$0xff]  }
  0x45   :  { %997 = vmatpush3.bf16.msra.mxu1 %v1101_v8  ;;  %v1113_v25 = vld [vmem:[#allocation9 + $0x20] sm:$0xff]   ;;  %v1097_v27 = vld [vmem:[#allocation3 + $0x28] sm:$0xff]   ;;  %v1098_v29 = vld [vmem:[#allocation3 + $0x30] sm:$0xff]  }
  0x46   :  { %967 = vmatpush3.bf16.msra.mxu0 %v1086_v2  ;;  %998 = vmatprep.subr.bf16.mxu1 %v1102_v10  ;;  %v1112_v28 = vld [vmem:[#allocation8 + $0x8] sm:$0xff]   ;;  %v1115_v30 = vld [vmem:[#allocation8 + $0x10] sm:$0xff]   ;;  %v1099_v32 = vld [vmem:[#allocation3 + $0x38] sm:$0xff]  }
  0x47   :  { %968 = vmatprep.subr.bf16.mxu0 %v1087_v3  ;;  %v1117_v31 = vld [vmem:[#allocation9 + $0x10] sm:$0xff]   ;;  %v1116_v33 = vld [vmem:[#allocation8 + $0x18] sm:$0xff]   ;;  %v1118_v34 = vld [vmem:[#allocation9 + $0x8] sm:$0xff]  }
  0x48   :  { %v1119_v35 = vld [vmem:[#allocation8 + $0x20] sm:$0xff]   ;;  %v1120_v36 = vld [vmem:[#allocation8 + $0x28] sm:$0xff]   ;;  %v1122_v38 = vld [vmem:[#allocation8 + $0x30] sm:$0xff]  }
  0x49   :  { %999 = vmatpush3.bf16.msra.mxu1 %v1102_v10  ;;  %v1121_v37 = vld [vmem:[#allocation9] sm:$0xff]   ;;  %v1123_v39 = vld [vmem:[#allocation8 + $0x38] sm:$0xff]  }
  0x4a   :  { %969 = vmatpush3.bf16.msra.mxu0 %v1087_v3  ;;  %1000 = vmatprep.subr.bf16.mxu1 %v1103_v12 }
  0x4b   :  { %970 = vmatprep.subr.bf16.mxu0 %v1088_v5 }
  0x4d   :  { %1001 = vmatpush3.bf16.msra.mxu1 %v1103_v12 }
  0x4e   :  { %971 = vmatpush3.bf16.msra.mxu0 %v1088_v5  ;;  %1002 = vmatprep.subr.bf16.mxu1 %v1104_v13 }
  0x4f   :  { %972 = vmatprep.subr.bf16.mxu0 %v1089_v6 }
  0x51   :  { %1003 = vmatpush3.bf16.msra.mxu1 %v1104_v13  ;;  %v1330_v13 = vld [vmem:[%s1356_s5] ss:$0 sm:$0xff]  ;;  %s1259_s5 = smov [#allocation12]  }
  0x52   :  { %973 = vmatpush3.bf16.msra.mxu0 %v1089_v6  ;;  %1004 = vmatprep.subr.bf16.mxu1 %v1105_v18  ;;  %s859_s21 = sshll.u32 %s1259_s5, 4  ;;  %s860_s21 = int_to_ptr.vmem [resolvable:$true] %s859_s21 }
  0x53   :  { %974 = vmatprep.subr.bf16.mxu0 %v1090_v9  ;;  %s1224_s22 = scalar_lea.vmem %s860_s21, 2048  ;;  %p1229_p12 = scmp.lt.s32.totalorder %s860_s21, %s860_s21 }
  0x54   :  { %p1225_p11 = scmp.ne.s32.totalorder %s860_s21, %s1224_s22  ;;  %p1230_p13 = scmp.lt.s32.totalorder %s1224_s22, %s1224_s22 }
  0x55   :  { %1005 = vmatpush3.bf16.msra.mxu1 %v1105_v18 }
  0x56   :  { %975 = vmatpush3.bf16.msra.mxu0 %v1090_v9  ;;  %1006 = vmatprep.subr.bf16.mxu1 %v1107_v20  ;;  %p1231_p0 = por %p1230_p13, %p1229_p12 }
  0x57   :  { %976 = vmatprep.subr.bf16.mxu0 %v1091_v11 }
  0x58   :  { %p1232_p1 = pnand %p1231_p0, %p1225_p11 }
  0x59   :  { %1007 = vmatpush3.bf16.msra.mxu1 %v1107_v20 }
  0x5a   :  { %977 = vmatpush3.bf16.msra.mxu0 %v1091_v11  ;;  %1008 = vmatprep.subr.bf16.mxu1 %v1109_v24 }
  0x5b   :  { %1026 = vmatprep.subr.bf16.mxu0 %v1106_v15 }
  0x5d   :  { %979 = vmatmul.mubr.bf16.vlgmr.msra.gmra.mxu0 %v1093_v16  ;;  %1009 = vmatpush3.bf16.msra.mxu1 %v1109_v24 }
  0x5e   :  { %982 = vmatprep.mubr.bf16.mxu0 %v1094_v17  ;;  %1027 = vmatpush3.bf16.msra.mxu0 %v1106_v15 }
  0x5f   :  { %1028 = vmatprep.subr.bf16.mxu0 %v1108_v19  ;;  %1058 = vmatprep.subr.bf16.mxu1 %v1106_v15 }
  0x60   :  { %1011 = vmatmul.mubr.bf16.vlgmr.msra.gmra.mxu1 %v1112_v28 }
  0x61   :  { %1066 = vmatpush3.bf16.msra.mxu1 %v1106_v15  ;;  %1014 = vmatprep.mubr.bf16.mxu1 %v1115_v30 }
  0x62   :  { %1029 = vmatpush3.bf16.msra.mxu0 %v1108_v19  ;;  %1059 = vmatprep.subr.bf16.mxu1 %v1108_v19 }
  0x63   :  { %1030 = vmatprep.subr.bf16.mxu0 %v1110_v21 }
  0x65   :  { %983 = vmatmul.mubr.bf16.gmra.mxu0 %v1095_v22  ;;  %1067 = vmatpush3.bf16.msra.mxu1 %v1108_v19 }
  0x66   :  { %986 = vmatprep.mubr.bf16.mxu0 %v1096_v23  ;;  %1031 = vmatpush3.bf16.msra.mxu0 %v1110_v21 }
  0x67   :  { %1032 = vmatprep.subr.bf16.mxu0 %v1113_v25  ;;  %1060 = vmatprep.subr.bf16.mxu1 %v1110_v21 }
  0x68   :  { %1015 = vmatmul.mubr.bf16.gmra.mxu1 %v1116_v33 }
  0x69   :  { %1068 = vmatpush3.bf16.msra.mxu1 %v1110_v21  ;;  %1018 = vmatprep.mubr.bf16.mxu1 %v1119_v35 }
  0x6a   :  { %1033 = vmatpush3.bf16.msra.mxu0 %v1113_v25  ;;  %1061 = vmatprep.subr.bf16.mxu1 %v1113_v25 }
  0x6b   :  { %1034 = vmatprep.subr.bf16.mxu0 %v1114_v26 }
  0x6d   :  { %987 = vmatmul.mubr.bf16.gmra.mxu0 %v1097_v27  ;;  %1069 = vmatpush3.bf16.msra.mxu1 %v1113_v25 }
  0x6e   :  { %990 = vmatprep.mubr.bf16.mxu0 %v1098_v29  ;;  %1035 = vmatpush3.bf16.msra.mxu0 %v1114_v26 }
  0x6f   :  { %1036 = vmatprep.subr.bf16.mxu0 %v1117_v31  ;;  %1062 = vmatprep.subr.bf16.mxu1 %v1114_v26 }
  0x70   :  { %1019 = vmatmul.mubr.bf16.gmra.mxu1 %v1120_v36 }
  0x71   :  { %1070 = vmatpush3.bf16.msra.mxu1 %v1114_v26  ;;  %1022 = vmatprep.mubr.bf16.mxu1 %v1122_v38 }
  0x72   :  { %1037 = vmatpush3.bf16.msra.mxu0 %v1117_v31  ;;  %1063 = vmatprep.subr.bf16.mxu1 %v1117_v31 }
  0x73   :  { %1038 = vmatprep.subr.bf16.mxu0 %v1118_v34 }
  0x75   :  { %991 = vmatmul.mubr.bf16.gmra.mxu0 %v1099_v32  ;;  %1071 = vmatpush3.bf16.msra.mxu1 %v1117_v31 }
  0x76   :  { %1064 = vmatprep.subr.bf16.mxu1 %v1118_v34  ;;  %1039 = vmatpush3.bf16.msra.mxu0 %v1118_v34 }
  0x77   :  { %1040 = vmatprep.subr.bf16.mxu0 %v1121_v37 }
  0x78   :  { %1023 = vmatmul.mubr.bf16.gmra.mxu1 %v1123_v39 }
  0x79   :  { %1072 = vmatpush3.bf16.msra.mxu1 %v1118_v34 }
  0x7a   :  { %1065 = vmatprep.subr.bf16.mxu1 %v1121_v37  ;;  %1041 = vmatpush3.bf16.msra.mxu0 %v1121_v37 }
  0x7d   :  { %1073 = vmatpush3.bf16.msra.mxu1 %v1121_v37 }
 0x11d   :  { %v980_v40 = vpop.f32.mrf.mxu0 }
 0x11f   :  { %v291_v41 = vpop.f32.mrf.mxu0 }
 0x120   :  { %v1012_v0 = vpop.f32.mrf.mxu1 }
 0x121   :  { %v981_v42 = vpop.f32.mrf.mxu0 }
 0x122   :  { %v406_v45 = vpack.c.bf16 %v981_v42, %v980_v40  ;;  %v591_v1 = vpop.f32.mrf.mxu1 }
 0x123   :  { %v294_v43 = vpop.f32.mrf.mxu0 }
 0x124   :  { %v405_v44 = vpack.c.bf16 %v294_v43, %v291_v41  ;;  %v1013_v2 = vpop.f32.mrf.mxu1 }
 0x125   :  { %v984_v46 = vpop.f32.mrf.mxu0 }
 0x126   :  { %1042 = vmatprep.mubr.bf16.mxu0 %v405_v44  ;;  %v594_v3 = vpop.f32.mrf.mxu1 }
 0x127   :  { %v307_v47 = vpop.f32.mrf.mxu0  ;;  %1043 = vmatmul.mubr.bf16.vlgmr.msra.gmra.mxu0 %v406_v45 }
 0x128   :  { %v1016_v4 = vpop.f32.mrf.mxu1 }
 0x129   :  { %v985_v48 = vpop.f32.mrf.mxu0 }
 0x12a   :  { %v408_v51 = vpack.c.bf16 %v985_v48, %v984_v46  ;;  %v607_v5 = vpop.f32.mrf.mxu1 }
 0x12b   :  { %v310_v49 = vpop.f32.mrf.mxu0 }
 0x12c   :  { %v407_v50 = vpack.c.bf16 %v310_v49, %v307_v47  ;;  %v1017_v6 = vpop.f32.mrf.mxu1 }
 0x12d   :  { %v988_v52 = vpop.f32.mrf.mxu0 }
 0x12e   :  { %1046 = vmatprep.mubr.bf16.mxu0 %v407_v50  ;;  %v610_v7 = vpop.f32.mrf.mxu1 }
 0x12f   :  { %v323_v53 = vpop.f32.mrf.mxu0  ;;  %1047 = vmatmul.mubr.bf16.gmra.mxu0 %v408_v51 }
 0x130   :  { %v1020_v8 = vpop.f32.mrf.mxu1 }
 0x131   :  { %v989_v54 = vpop.f32.mrf.mxu0 }
 0x132   :  { %v410_v57 = vpack.c.bf16 %v989_v54, %v988_v52  ;;  %v623_v9 = vpop.f32.mrf.mxu1 }
 0x133   :  { %v326_v55 = vpop.f32.mrf.mxu0 }
 0x134   :  { %v409_v56 = vpack.c.bf16 %v326_v55, %v323_v53  ;;  %v1021_v10 = vpop.f32.mrf.mxu1 }
 0x135   :  { %v992_v58 = vpop.f32.mrf.mxu0 }
 0x136   :  { %1050 = vmatprep.mubr.bf16.mxu1 %v409_v56  ;;  %v626_v11 = vpop.f32.mrf.mxu1 }
 0x137   :  { %v339_v59 = vpop.f32.mrf.mxu0  ;;  %1051 = vmatmul.mubr.bf16.vlgmr.msra.gmra.mxu1 %v410_v57 }
 0x138   :  { %v1024_v15 = vpop.f32.mrf.mxu1 }
 0x139   :  { %v993_v60 = vpop.f32.mrf.mxu0 }
 0x13a   :  { %v412_v63 = vpack.c.bf16 %v993_v60, %v992_v58  ;;  %v639_v23 = vpop.f32.mrf.mxu1 }
 0x13b   :  { %v342_v61 = vpop.f32.mrf.mxu0 }
 0x13c   :  { %v411_v62 = vpack.c.bf16 %v342_v61, %v339_v59  ;;  %v1025_v32 = vpop.f32.mrf.mxu1 }
 0x13e   :  { %1054 = vmatprep.mubr.bf16.mxu1 %v411_v62  ;;  %v642_v41 = vpop.f32.mrf.mxu1 }
 0x13f   :  { %1055 = vmatmul.mubr.bf16.gmra.mxu1 %v412_v63 }
 0x1e7   :  { %v1044_v12 = vpop.f32.mrf.mxu0 }
 0x1e8   :  { %v745_v14 = vadd.f32 %v1044_v12, %v1012_v0 }
 0x1e9   :  { %v736_v16 = vpop.f32.mrf.mxu0 }
 0x1ea   :  { %v808_v17 = vadd.f32 %v1330_v13, %v745_v14  ;;  %v737_v18 = vadd.f32 %v736_v16, %v591_v1 }
 0x1eb   :  { %v1045_v19 = vpop.f32.mrf.mxu0 }
 0x1ec   :  { %v824_v20 = vmax.f32 %v808_v17, 0.0  ;;  %v806_v21 = vadd.f32 %v1330_v13, %v737_v18  ;;  %v748_v22 = vadd.f32 %v1045_v19, %v1013_v2 }
 0x1ed   :  { %v739_v24 = vpop.f32.mrf.mxu0 }
 0x1ee   :  { %840 = vst [vmem:[#allocation12 + $0x10] sm:$0xff] %v824_v20  ;;  %v822_v25 = vmax.f32 %v806_v21, 0.0  ;;  %v809_v26 = vadd.f32 %v1330_v13, %v748_v22  ;;  %v740_v27 = vadd.f32 %v739_v24, %v594_v3 }
 0x1ef   :  { %v1048_v28 = vpop.f32.mrf.mxu0 }
 0x1f0   :  { %838 = vst [vmem:[#allocation12] sm:$0xff] %v822_v25  ;;  %v825_v29 = vmax.f32 %v809_v26, 0.0  ;;  %v807_v30 = vadd.f32 %v1330_v13, %v740_v27  ;;  %v761_v31 = vadd.f32 %v1048_v28, %v1016_v4 }
 0x1f1   :  { %v752_v33 = vpop.f32.mrf.mxu0 }
 0x1f2   :  { %841 = vst [vmem:[#allocation12 + $0x18] sm:$0xff] %v825_v29  ;;  %v823_v34 = vmax.f32 %v807_v30, 0.0  ;;  %v812_v35 = vadd.f32 %v1330_v13, %v761_v31  ;;  %v753_v36 = vadd.f32 %v752_v33, %v607_v5 }
 0x1f3   :  { %v1049_v37 = vpop.f32.mrf.mxu0 }
 0x1f4   :  { %839 = vst [vmem:[#allocation12 + $0x8] sm:$0xff] %v823_v34  ;;  %v828_v38 = vmax.f32 %v812_v35, 0.0  ;;  %v810_v39 = vadd.f32 %v1330_v13, %v753_v36  ;;  %v764_v40 = vadd.f32 %v1049_v37, %v1017_v6 }
 0x1f5   :  { %v755_v42 = vpop.f32.mrf.mxu0 }
 0x1f6   :  { %844 = vst [vmem:[#allocation12 + $0x30] sm:$0xff] %v828_v38  ;;  %v826_v43 = vmax.f32 %v810_v39, 0.0  ;;  %v813_v44 = vadd.f32 %v1330_v13, %v764_v40  ;;  %v756_v45 = vadd.f32 %v755_v42, %v610_v7 }
 0x1f7   :  { %v1052_v46 = vpop.f32.mrf.mxu1 }
 0x1f8   :  { %842 = vst [vmem:[#allocation12 + $0x20] sm:$0xff] %v826_v43  ;;  %v829_v47 = vmax.f32 %v813_v44, 0.0  ;;  %v811_v48 = vadd.f32 %v1330_v13, %v756_v45  ;;  %v777_v49 = vadd.f32 %v1052_v46, %v1020_v8 }
 0x1f9   :  { %v768_v50 = vpop.f32.mrf.mxu1 }
 0x1fa   :  { %845 = vst [vmem:[#allocation12 + $0x38] sm:$0xff] %v829_v47  ;;  %v827_v51 = vmax.f32 %v811_v48, 0.0  ;;  %v816_v52 = vadd.f32 %v1330_v13, %v777_v49  ;;  %v769_v53 = vadd.f32 %v768_v50, %v623_v9 }
 0x1fb   :  { %v1053_v54 = vpop.f32.mrf.mxu1 }
 0x1fc   :  { %843 = vst [vmem:[#allocation12 + $0x28] sm:$0xff] %v827_v51  ;;  %v832_v55 = vmax.f32 %v816_v52, 0.0  ;;  %v814_v56 = vadd.f32 %v1330_v13, %v769_v53  ;;  %v780_v57 = vadd.f32 %v1053_v54, %v1021_v10 }
 0x1fd   :  { %v771_v58 = vpop.f32.mrf.mxu1 }
 0x1fe   :  { %848 = vst [vmem:[#allocation12 + $0x50] sm:$0xff] %v832_v55  ;;  %v830_v59 = vmax.f32 %v814_v56, 0.0  ;;  %v817_v60 = vadd.f32 %v1330_v13, %v780_v57  ;;  %v772_v61 = vadd.f32 %v771_v58, %v626_v11 }
 0x1ff   :  { %v1056_v62 = vpop.f32.mrf.mxu1 }
 0x200   :  { %846 = vst [vmem:[#allocation12 + $0x40] sm:$0xff] %v830_v59  ;;  %v833_v63 = vmax.f32 %v817_v60, 0.0  ;;  %v815_v0 = vadd.f32 %v1330_v13, %v772_v61  ;;  %v793_v1 = vadd.f32 %v1056_v62, %v1024_v15 }
 0x201   :  { %v784_v2 = vpop.f32.mrf.mxu1 }
 0x202   :  { %849 = vst [vmem:[#allocation12 + $0x58] sm:$0xff] %v833_v63  ;;  %v831_v3 = vmax.f32 %v815_v0, 0.0  ;;  %v820_v4 = vadd.f32 %v1330_v13, %v793_v1  ;;  %v785_v5 = vadd.f32 %v784_v2, %v639_v23 }
 0x203   :  { %v1057_v6 = vpop.f32.mrf.mxu1 }
 0x204   :  { %847 = vst [vmem:[#allocation12 + $0x48] sm:$0xff] %v831_v3  ;;  %v836_v7 = vmax.f32 %v820_v4, 0.0  ;;  %v818_v8 = vadd.f32 %v1330_v13, %v785_v5  ;;  %v796_v9 = vadd.f32 %v1057_v6, %v1025_v32 }
 0x205   :  { %v787_v10 = vpop.f32.mrf.mxu1 }
 0x206   :  { %852 = vst [vmem:[#allocation12 + $0x70] sm:$0xff] %v836_v7  ;;  %v834_v11 = vmax.f32 %v818_v8, 0.0  ;;  %v821_v12 = vadd.f32 %v1330_v13, %v796_v9  ;;  %v788_v14 = vadd.f32 %v787_v10, %v642_v41 }
 0x208   :  { %850 = vst [vmem:[#allocation12 + $0x60] sm:$0xff] %v834_v11  ;;  %v837_v15 = vmax.f32 %v821_v12, 0.0  ;;  %v819_v16 = vadd.f32 %v1330_v13, %v788_v14 }
 0x20a   :  { %853 = vst [vmem:[#allocation12 + $0x78] sm:$0xff] %v837_v15  ;;  %v835_v17 = vmax.f32 %v819_v16, 0.0 }
 0x20c   :  { %851 = vst [vmem:[#allocation12 + $0x68] sm:$0xff] %v835_v17 }
 0x20d   :  { %1235 = shalt.err (!%p1232_p1)
}
 0x20e   :  { %s1260_s23 = smov 128   ;;  %s1261_s24 = smov 8  }
 0x20f   :  { %865 = dma.vmem_to_hbm [thread:$0]  %s860_s21, 2048, %s1357_s6, [#allocation5], %s1260_s23, %s1260_s23, %s1261_s24  }
 0x210   :  { %1250 = dma.done.wait [#allocation5], 2048  }
 0x211   :  { %1251 = vsyncadd [#allocation5], 4294965248 }
 0x212   :  { %869 = vsyncpa [#allocation4], 1 }
 0x213   :  { %870 = vsyncpa [#allocation7], 1 }
 0x214   :  { %871 = vsyncpa [#allocation10], 1 }
 0x215   :  { %872 = vsyncpa [#allocation5], 1 }

</bundles_post_ra>
